<compile_context>
chip_gen: v5e
topology: v5e:2x2
jax: 0.10.0
libtpu: 0.0.40
codegen_flags: <defaults>
</compile_context>

<pallas_src>
import functools

import jax
import jax.numpy as jnp
from jax.experimental import pallas as pl
from jax.experimental.pallas import tpu as pltpu


F_PAD = 128  # lane-dense feature width (multiple of 128)


def _round_up(x, m):
    return (x + m - 1) // m * m


# ----------------------------- Fused Pallas kernel ---------------------------
def _fused_gcn_kernel(a_ref, x_ref, w_ref, b_ref, o_ref, h_ref, xw_ref, *, tm):
    """Fused 3-layer GCN.

    Grid: (num_layers, num_row_tiles), both axes sequential ("arbitrary") because
    layer l depends on all row tiles of layer l-1 via the resident VMEM scratch.

    a_ref : [N_pad, N_pad] f32  normalized adjacency (resident, loaded once)
    x_ref : [N_pad, F_PAD] f32  padded input features (resident, loaded once)
    w_ref : [1, F_PAD, F_PAD]   this layer's padded weight
    b_ref : [1, 1, F_PAD]       this layer's padded bias
    o_ref : [tm, F_PAD]         output row tile (last layer's write survives)
    h_ref : [N_pad, F_PAD] f32  VMEM scratch: current activations (persists)
    xw_ref: [N_pad, F_PAD] f32  VMEM scratch: H @ W for the current layer
    """
    l = pl.program_id(0)            # layer index (outer)
    i = pl.program_id(1)            # node row-tile index (inner)
    n_layers = pl.num_programs(0)

    # Per-layer prologue (first row tile of each layer): refresh XW = H @ W_l
    # for the whole padded graph. W is tiny and fully resident in VMEM.
    @pl.when(i == 0)
    def _():
        @pl.when(l == 0)
        def _():
            h_ref[...] = x_ref[...]  # layer-0 input features
        xw_ref[...] = jnp.dot(
            h_ref[...], w_ref[0], preferred_element_type=jnp.float32
        )

    # Row tile of A_hat @ XW + b on the MXU with f32 accumulation.
    start = pl.multiple_of(i * tm, 8)
    a_tile = a_ref[pl.ds(start, tm), :]                     # [tm, N_pad]
    out = jnp.dot(a_tile, xw_ref[...],
                  preferred_element_type=jnp.float32) + b_ref[0]

    # ReLU on every layer except the last (scalar select -> plain VPU max).
    floor = jnp.where(l == n_layers - 1, -jnp.inf, 0.0).astype(jnp.float32)
    out = jnp.maximum(out, floor)

    # Intermediate activations stay in VMEM (no HBM round trip between layers).
    h_ref[pl.ds(start, tm), :] = out
    # Lane-dense [tm, 128] store; only the last layer's write is kept in HBM.
    o_ref[...] = out.astype(o_ref.dtype)


def fused_gcn_forward(a_hat, x, weights, biases):
    """Pad to lane-dense shapes and run the fused kernel; returns padded output."""
    n = x.shape[0]
    n_layers = len(weights)

    tm = min(256, _round_up(n, 8))        # row tile (multiple of 8)
    n_pad = _round_up(n, tm)
    n_tiles = n_pad // tm

    a_p = jnp.zeros((n_pad, n_pad), jnp.float32).at[:n, :n].set(a_hat)
    x_p = jnp.zeros((n_pad, F_PAD), jnp.float32).at[:n, : x.shape[1]].set(x)

    def pad_w(w):
        return (jnp.zeros((F_PAD, F_PAD), jnp.float32)
                .at[: w.shape[0], : w.shape[1]].set(w))

    def pad_b(b):
        return jnp.zeros((1, F_PAD), jnp.float32).at[:, : b.shape[1]].set(b)

    w_all = jnp.stack([pad_w(w) for w in weights])   # [L, 128, 128]
    b_all = jnp.stack([pad_b(b) for b in biases])    # [L, 1, 128]

    # Advisory cost / explicit VMEM budget (keeps behaviour stable on 64 MiB v7x).
    flops = n_layers * (2 * n_pad * F_PAD * F_PAD + 2 * n_pad * n_pad * F_PAD)
    bytes_accessed = 4 * (n_pad * n_pad + 2 * n_pad * F_PAD
                          + n_layers * (F_PAD * F_PAD + F_PAD))
    vmem_needed = 4 * (n_pad * n_pad            # resident A_hat
                       + n_pad * F_PAD          # resident X
                       + 2 * n_pad * F_PAD      # scratch H, XW
                       + 2 * F_PAD * F_PAD      # double-buffered W block
                       + 2 * F_PAD              # double-buffered bias block
                       + 2 * tm * F_PAD)        # double-buffered output tile
    vmem_limit = int(min(64 * 1024 * 1024, vmem_needed + (8 << 20)))

    kernel = functools.partial(_fused_gcn_kernel, tm=tm)
    out_p = pl.pallas_call(
        kernel,
        out_shape=jax.ShapeDtypeStruct((n_pad, F_PAD), jnp.float32),
        grid_spec=pltpu.PrefetchScalarGridSpec(
            num_scalar_prefetch=0,
            grid=(n_layers, n_tiles),
            in_specs=[
                # Constant block index across the whole grid -> loaded once, resident.
                pl.BlockSpec((n_pad, n_pad), lambda l, i: (0, 0)),   # A_hat
                pl.BlockSpec((n_pad, F_PAD), lambda l, i: (0, 0)),   # X
                pl.BlockSpec((1, F_PAD, F_PAD), lambda l, i: (l, 0, 0)),  # W_l
                pl.BlockSpec((1, 1, F_PAD), lambda l, i: (l, 0, 0)),      # b_l
            ],
            out_specs=pl.BlockSpec((tm, F_PAD), lambda l, i: (i, 0)),
            scratch_shapes=[
                pltpu.VMEM((n_pad, F_PAD), jnp.float32),   # H  (activations)
                pltpu.VMEM((n_pad, F_PAD), jnp.float32),   # XW (current layer)
            ],
        ),
        compiler_params=pltpu.CompilerParams(
            # Both axes are sequential: layer l needs all row tiles of layer l-1,
            # and row tiles share the H/XW scratch (not megacore-shardable).
            dimension_semantics=("arbitrary", "arbitrary"),
            vmem_limit_bytes=vmem_limit,
        ),
        cost_estimate=pl.CostEstimate(
            flops=flops, transcendentals=0, bytes_accessed=bytes_accessed),
    )(a_p, x_p, w_all, b_all)

    return out_p


# ------------------------------ Glue (JAX) ------------------------------------
def build_normalized_adjacency(edge_index, num_nodes):
    """Dense A_hat = D^{-1/2} (A + I) D^{-1/2} from a [2, E] int edge_index."""
    src, dst = edge_index[0], edge_index[1]
    a = jnp.zeros((num_nodes, num_nodes), dtype=jnp.float32)
    # message flows src -> dst: row = dst (receiver), col = src (sender)
    a = a.at[dst, src].set(1.0)
    a = a + jnp.eye(num_nodes, dtype=jnp.float32)  # add self loops
    deg = jnp.sum(a, axis=1)
    d_inv_sqrt = jnp.where(deg > 0, 1.0 / jnp.sqrt(deg), 0.0)
    return a * d_inv_sqrt[:, None] * d_inv_sqrt[None, :]


def init_params(key, input_dim, hidden_dim, output_dim):
    """Deterministic Glorot-style init for the three GCNConv layers."""
    def glorot(k, fan_in, fan_out):
        scale = jnp.sqrt(6.0 / (fan_in + fan_out))
        return jax.random.uniform(
            k, (fan_in, fan_out), dtype=jnp.float32, minval=-scale, maxval=scale
        )

    k1, k2, k3 = jax.random.split(key, 3)
    return {
        "w1": glorot(k1, input_dim, hidden_dim),
        "b1": jnp.zeros((1, hidden_dim), jnp.float32),
        "w2": glorot(k2, hidden_dim, hidden_dim),
        "b2": jnp.zeros((1, hidden_dim), jnp.float32),
        "w3": glorot(k3, hidden_dim, output_dim),
        "b3": jnp.zeros((1, output_dim), jnp.float32),
    }


def gcn_model_forward(x, edge_index, params):
    n = x.shape[0]
    output_dim = params["w3"].shape[1]
    a_hat = build_normalized_adjacency(edge_index, n)
    out_p = fused_gcn_forward(
        a_hat, x,
        weights=[params["w1"], params["w2"], params["w3"]],
        biases=[params["b1"], params["b2"], params["b3"]],
    )
    # slice away node / lane padding
    return out_p[:n, :output_dim]


# ------------------------------ Reference -------------------------------------
def gcn_model_reference(x, edge_index, params):
    a_hat = build_normalized_adjacency(edge_index, x.shape[0])
    h = jnp.maximum(a_hat @ (x @ params["w1"]) + params["b1"], 0.0)
    h = jnp.maximum(a_hat @ (h @ params["w2"]) + params["b2"], 0.0)
    return a_hat @ (h @ params["w3"]) + params["b3"]


# --------------------------------- Main ----------------------------------------
if __name__ == "__main__":
    key = jax.random.PRNGKey(0)
    k_x, k_e, k_p = jax.random.split(key, 3)

    num_nodes = 16
    input_dim = 8
    hidden_dim = 32
    output_dim = 4
    num_edges = 48

    x = jax.random.normal(k_x, (num_nodes, input_dim), dtype=jnp.float32)
    edge_index = jax.random.randint(
        k_e, (2, num_edges), minval=0, maxval=num_nodes, dtype=jnp.int32
    )
    params = init_params(k_p, input_dim, hidden_dim, output_dim)

    out = gcn_model_forward(x, edge_index, params)
    out = jax.block_until_ready(out)

    ref = gcn_model_reference(x, edge_index, params)
    assert out.shape == (num_nodes, output_dim)
    assert jnp.allclose(out, ref, atol=1e-4, rtol=1e-4), "mismatch vs reference"

    print("KERNEL_OK")
</pallas_src>

<mosaic_0001>
module attributes {stable_mosaic.version = 11 : i64} {
  func.func @_fused_gcn_kernel(%arg0: i32, %arg1: i32, %arg2: memref<16x16xf32, #tpu.memory_space<vmem>>, %arg3: memref<16x128xf32, #tpu.memory_space<vmem>>, %arg4: memref<1x128x128xf32, #tpu.memory_space<vmem>>, %arg5: memref<1x1x128xf32, #tpu.memory_space<vmem>>, %arg6: memref<16x128xf32, #tpu.memory_space<vmem>>, %arg7: memref<16x128xf32, #tpu.memory_space<vmem>>, %arg8: memref<16x128xf32, #tpu.memory_space<vmem>>) attributes {dimension_semantics = [#tpu.dimension_semantics<arbitrary>, #tpu.dimension_semantics<arbitrary>], iteration_bounds = array<i64: 3, 1>, scalar_prefetch = 0 : i64, scratch_operands = 2 : i64, tpu.core_type = #tpu.core_type<tc>, window_params = [{pipeline_mode = #tpu.pipeline_mode<synchronous>, transform_indices = @transform_0, window_bounds = array<i64: 16, 16>}, {pipeline_mode = #tpu.pipeline_mode<synchronous>, transform_indices = @transform_1, window_bounds = array<i64: 16, 128>}, {transform_indices = @transform_2, window_bounds = array<i64: 1, 128, 128>}, {transform_indices = @transform_3, window_bounds = array<i64: 1, 1, 128>}, {transform_indices = @transform_4, window_bounds = array<i64: 16, 128>}]} {
    %c0_i32 = arith.constant 0 : i32
    %0 = arith.cmpi eq, %arg1, %c0_i32 : i32
    %1 = arith.extui %0 : i1 to i32
    %c0_i32_0 = arith.constant 0 : i32
    %2 = arith.cmpi ne, %1, %c0_i32_0 : i32
    scf.if %2 {
      %c0_i32_11 = arith.constant 0 : i32
      %20 = arith.cmpi eq, %arg0, %c0_i32_11 : i32
      %21 = arith.extui %20 : i1 to i32
      %c0_i32_12 = arith.constant 0 : i32
      %22 = arith.cmpi ne, %21, %c0_i32_12 : i32
      scf.if %22 {
        %c0_21 = arith.constant 0 : index
        %c0_22 = arith.constant 0 : index
        %28 = vector.load %arg3[%c0_21, %c0_22] : memref<16x128xf32, #tpu.memory_space<vmem>>, vector<16x128xf32>
        %c0_23 = arith.constant 0 : index
        %c0_24 = arith.constant 0 : index
        %29 = vector.load %arg7[%c0_23, %c0_24] : memref<16x128xf32, #tpu.memory_space<vmem>>, vector<16x128xf32>
        tpu.vector_store %arg7[%c0_23, %c0_24], %28 {strides = array<i32>} : memref<16x128xf32, #tpu.memory_space<vmem>>, vector<16x128xf32>,
      } else {
      }
      %c0_13 = arith.constant 0 : index
      %c0_14 = arith.constant 0 : index
      %23 = vector.load %arg7[%c0_13, %c0_14] : memref<16x128xf32, #tpu.memory_space<vmem>>, vector<16x128xf32>
      %c0_15 = arith.constant 0 : index
      %c0_16 = arith.constant 0 : index
      %c0_17 = arith.constant 0 : index
      %24 = vector.load %arg4[%c0_15, %c0_16, %c0_17] : memref<1x128x128xf32, #tpu.memory_space<vmem>>, vector<1x128x128xf32>
      %25 = vector.shape_cast %24 : vector<1x128x128xf32> to vector<128x128xf32>
      %cst_18 = arith.constant dense<0.000000e+00> : vector<16x128xf32>
      %26 = tpu.matmul %23, %25, %cst_18 {dimension_numbers = #tpu.dot_dimension_numbers<[1], [0], [0], [1], [0, 0, 1, 1], [], []>} : vector<16x128xf32>, vector<128x128xf32>, vector<16x128xf32> -> vector<16x128xf32>
      %c0_19 = arith.constant 0 : index
      %c0_20 = arith.constant 0 : index
      %27 = vector.load %arg8[%c0_19, %c0_20] : memref<16x128xf32, #tpu.memory_space<vmem>>, vector<16x128xf32>
      tpu.vector_store %arg8[%c0_19, %c0_20], %26 {strides = array<i32>} : memref<16x128xf32, #tpu.memory_space<vmem>>, vector<16x128xf32>,
    } else {
    }
    %c16_i32 = arith.constant 16 : i32
    %3 = arith.muli %arg1, %c16_i32 : i32
    %4 = tpu.assume_multiple %3, 8 : i32
    %5 = arith.index_cast %4 : i32 to index
    %c0 = arith.constant 0 : index
    %6 = vector.load %arg2[%5, %c0] : memref<16x16xf32, #tpu.memory_space<vmem>>, vector<16x16xf32>
    %c0_1 = arith.constant 0 : index
    %c0_2 = arith.constant 0 : index
    %7 = vector.load %arg8[%c0_1, %c0_2] : memref<16x128xf32, #tpu.memory_space<vmem>>, vector<16x128xf32>
    %cst = arith.constant dense<0.000000e+00> : vector<16x128xf32>
    %8 = tpu.matmul %6, %7, %cst {dimension_numbers = #tpu.dot_dimension_numbers<[1], [0], [0], [1], [0, 0, 1, 1], [], []>} : vector<16x16xf32>, vector<16x128xf32>, vector<16x128xf32> -> vector<16x128xf32>
    %c0_3 = arith.constant 0 : index
    %c0_4 = arith.constant 0 : index
    %c0_5 = arith.constant 0 : index
    %9 = vector.load %arg5[%c0_3, %c0_4, %c0_5] : memref<1x1x128xf32, #tpu.memory_space<vmem>>, vector<1x1x128xf32>
    %10 = vector.shape_cast %9 : vector<1x1x128xf32> to vector<1x128xf32>
    %11 = vector.broadcast %10 : vector<1x128xf32> to vector<16x128xf32>
    %12 = arith.addf %8, %11 : vector<16x128xf32>
    %c2_i32 = arith.constant 2 : i32
    %13 = arith.cmpi eq, %arg0, %c2_i32 : i32
    %cst_6 = arith.constant 0xFF800000 : f32
    %cst_7 = arith.constant 0.000000e+00 : f32
    %14 = arith.select %13, %cst_6, %cst_7 : f32
    %15 = vector.broadcast %14 : f32 to vector<16x128xf32>
    %16 = arith.maximumf %12, %15 : vector<16x128xf32>
    %17 = arith.index_cast %4 : i32 to index
    %c0_8 = arith.constant 0 : index
    %18 = vector.load %arg7[%17, %c0_8] : memref<16x128xf32, #tpu.memory_space<vmem>>, vector<16x128xf32>
    tpu.vector_store %arg7[%17, %c0_8], %16 {strides = array<i32>} : memref<16x128xf32, #tpu.memory_space<vmem>>, vector<16x128xf32>,
    %c0_9 = arith.constant 0 : index
    %c0_10 = arith.constant 0 : index
    %19 = vector.load %arg6[%c0_9, %c0_10] : memref<16x128xf32, #tpu.memory_space<vmem>>, vector<16x128xf32>
    tpu.vector_store %arg6[%c0_9, %c0_10], %16 {strides = array<i32>} : memref<16x128xf32, #tpu.memory_space<vmem>>, vector<16x128xf32>,
    return
  }
  func.func @transform_0(%arg0: i32, %arg1: i32) -> (i32, i32) {
    %c0_i32 = arith.constant 0 : i32
    %c0_i32_0 = arith.constant 0 : i32
    %c0_i32_1 = arith.constant 0 : i32
    return %c0_i32, %c0_i32_0 : i32, i32
  }
  func.func @transform_1(%arg0: i32, %arg1: i32) -> (i32, i32) {
    %c0_i32 = arith.constant 0 : i32
    %c0_i32_0 = arith.constant 0 : i32
    %c0_i32_1 = arith.constant 0 : i32
    return %c0_i32, %c0_i32_0 : i32, i32
  }
  func.func @transform_2(%arg0: i32, %arg1: i32) -> (i32, i32, i32) {
    %c0_i32 = arith.constant 0 : i32
    %c0_i32_0 = arith.constant 0 : i32
    %c0_i32_1 = arith.constant 0 : i32
    return %arg0, %c0_i32, %c0_i32_0 : i32, i32, i32
  }
  func.func @transform_3(%arg0: i32, %arg1: i32) -> (i32, i32, i32) {
    %c0_i32 = arith.constant 0 : i32
    %c0_i32_0 = arith.constant 0 : i32
    %c0_i32_1 = arith.constant 0 : i32
    return %arg0, %c0_i32, %c0_i32_0 : i32, i32, i32
  }
  func.func @transform_4(%arg0: i32, %arg1: i32) -> (i32, i32) {
    %c0_i32 = arith.constant 0 : i32
    %c0_i32_0 = arith.constant 0 : i32
    return %arg1, %c0_i32 : i32, i32
  }
}

</mosaic_0001>

<bundles_post_ra>
// kernel: tpu_custom_call.1
= control target key start
LH: loop header
LB: loop body
LE: loop exit
PB: predicated region body
PF: predicated region fallthrough
CT: control target
= control target key end

     0   :  { %s1051_s0 = inlined_call_operand.hbm [shape: f32[16,16], index: 0, kind: input, shape index: {}]   ;;  %s1052_s1 = inlined_call_operand.hbm [shape: f32[16,128], index: 1, kind: input, shape index: {}]   ;;  %s1053_s2 = inlined_call_operand.hbm [shape: f32[3,128,128], index: 2, kind: input, shape index: {}]   ;;  %s1054_s3 = inlined_call_operand.hbm [shape: f32[3,1,128], index: 3, kind: input, shape index: {}]   ;;  %s1055_s4 = inlined_call_operand.hbm [shape: f32[16,128], index: 4, kind: output, shape index: {}]  }
   0x1   :  { %1060 = sst [smem:[#allocation16_spill]] %s1051_s0 }
   0x2   :  { %9 = vsyncpa [#allocation5], 0 }
   0x3   :  { %10 = vsyncpa [#allocation8], 0 }
   0x4   :  { %11 = vsyncpa [#allocation6], 0  ;;  %s879_s15 = smov 0   ;;  %s881_s16 = smov 0  }
   0x5   :  { %s883_s17 = smov 0   ;;  %s885_s18 = smov 0  }
   0x6   :  { %s887_s19 = smov 0   ;;  %s889_s20 = smov 0  }
   0x7 LB: > { %s908_s21 = sadd.s32 4294967295, %s845_s20   ;;  %p91_p0 = scmp.ne.s32.totalorder %s829_s16, %s825_s15  ;;  %s845_s20 = sphi %s889_s20, %s17_s20   ;;  %s841_s19 = sphi %s887_s19, %s1073_s19   ;;  %s837_s18 = sphi %s885_s18, %s1072_s18   ;;  %s833_s17 = sphi %s883_s17, %s1071_s17   ;;  %s829_s16 = sphi %s881_s16, %s1070_s16   ;;  %s825_s15 = sphi %s879_s15, %s1069_s15  }
   0x8   : > { %p92_p1 = scmp.eq.s32.totalorder %s908_s21, 0  ;;  %p507_p2 = scmp.ge.s32.totalorder %s845_s20, 1 }
   0x9   : > { %p154_p3 = scmp.lt.s32.totalorder %s845_s20, 4  ;;  %s1062_s0 = sld [smem:[#allocation16_spill]] }
   0xa   : > { %p916_p4 = por %p92_p1, %p91_p0  ;;  %s847_s27 = smov [#allocation4]  }
   0xb   : > { %p923_p5 = pnand %p507_p2, %p154_p3  ;;  %s167_s28 = sshll.u32 %s847_s27, 4  ;;  %s168_s28 = int_to_ptr.vmem [resolvable:$true] %s167_s28 }
   0xc   : > { %s1056_s30 = smov 128   ;;  %s1058_s5 = smov 8  }
   0xd   : > { %p558_p6 = pneg %p923_p5  ;;  %s29_s6 = sadd.s32 1, %s841_s19 }
   0xe   : > { %p31_p8 = scmp.ge.s32.totalorder %s29_s6, 3  ;;  %s78_s7 = sadd.s32 1, %s833_s17 }
   0xf   : > { %s165_s25 = sshll.u32 %s1062_s0, 4  ;;  %p931_p7 = pnand %p558_p6, %p92_p1  ;;  %s166_s25 = int_to_ptr.hbm [resolvable:$true] %s165_s25 }
  0x10   : > { %p85_p9 = scmp.ne.s32.totalorder %s833_s17, %s829_s16  ;;  %p86_p10 = scmp.eq.s32.totalorder %s845_s20, 0 }
  0x11   : > { %561 = dma.hbm_to_vmem [thread:$0]  (!%p931_p7), %s166_s25, 256, %s168_s28, [#allocation5], %s1056_s30, %s1056_s30, %s1058_s5  }
  0x12   : > { %s1075_s6 = smov (%p31_p8, %s29_s6), 0  ;;  %p947_p11 = por %p86_p10, %p85_p9 }
  0x13   : > { %p574_p12 = scmp.lt.s32.totalorder %s845_s20, 3  ;;  %s75_s9 = ssub.s32 %s841_s19, %s1075_s6 }
  0x14   : > { %s195_s10 = sand.u32 1, %s845_s20   ;;  %p76_p13 = scmp.eq.s32.totalorder %s75_s9, 0 }
  0x15   : > { %s197_s11 = sand.u32 1, %s833_s17   ;;  %s525_s12 = sshll.u32 %s841_s19, 7 }
  0x16   : > { %s958_s13 = scalar_select %p76_p13, %s833_s17, %s78_s7  }
  0x17   : > { %s511_s14 = sshll.u32 %s197_s11, 7  ;;  %s204_s24 = scalar_lea.hbm %s1053_s2, %s525_s12 }
  0x18   : > { %s205_s25 = sshll.u32 %s204_s24, 4  ;;  %s199_s27 = scalar_lea.vmem [#allocation9], %s511_s14  ;;  %s206_s25 = int_to_ptr.hbm [resolvable:$true] %s205_s25 }
  0x19   : > { %s207_s28 = sshll.u32 %s199_s27, 4  ;;  %p967_p0 = pnand %p574_p12, %p947_p11  ;;  %s208_s28 = int_to_ptr.vmem [resolvable:$true] %s207_s28 }
  0x1a   : > { %s179_s5 = sshll.u32 %s1052_s1, 4  ;;  %s196_s15 = scalar_lea.sflag [#allocation5], %s195_s10  ;;  %s180_s5 = int_to_ptr.hbm [resolvable:$true] %s179_s5 }
  0x1b   : > { %s1067_s12 = smov 8   ;;  %s1068_s23 = smov 128  }
  0x1c   : > { %568 = dma.hbm_to_vmem [thread:$0]  (!%p967_p0), %s206_s25, 2048, %s208_s28, %s196_s15, %s1068_s23, %s1068_s23, %s1067_s12  }
  0x1d   : > { %s850_s14 = smov [#allocation7]   ;;  %s223_s0 = scalar_lea.hbm %s1054_s3, %s841_s19 }
  0x1e   : > { %s181_s8 = sshll.u32 %s850_s14, 4  ;;  %s225_s30 = sshll.u32 %s223_s0, 4  ;;  %s182_s8 = int_to_ptr.vmem [resolvable:$true] %s181_s8  ;;  %s226_s30 = int_to_ptr.hbm [resolvable:$true] %s225_s30 }
  0x1f   : > { %564 = dma.hbm_to_vmem [thread:$0]  (!%p931_p7), %s180_s5, 256, %s182_s8, [#allocation8], %s1068_s23, %s1068_s23, %s1067_s12  }
  0x20   : > { %s220_s7 = scalar_lea.vmem [#allocation10], %s197_s11  ;;  %236 = sbr.rel (%p923_p5) target bundleno = 364 (0x16c), region = 36 }
  0x21   : > { %s227_s10 = sshll.u32 %s220_s7, 4  ;;  %s228_s10 = int_to_ptr.vmem [resolvable:$true] %s227_s10 }
  0x22   : > { %571 = dma.hbm_to_vmem [thread:$0]  (!%p967_p0), %s226_s30, 16, %s228_s10, %s196_s15  }
  0x25   : > { %808 = dma.done.wait (%p92_p1), [#allocation5], 256  }
  0x26   : > { %810 = vsyncadd (%p92_p1), [#allocation5], 4294967040 }
  0x27   : > { %812 = dma.done.wait (%p92_p1), [#allocation8], 256  }
  0x28   : > { %814 = vsyncadd (%p92_p1), [#allocation8], 4294967040  ;;  %s248_s0 = sand.u32 1, %s908_s21   ;;  %s250_s29 = sand.u32 1, %s829_s16  }
  0x29   : > { %s517_s5 = sshll.u32 %s250_s29, 7  ;;  %s249_s26 = scalar_lea.sflag [#allocation5], %s248_s0 }
  0x2a   : > { %s1002_s11 = scalar_lea.vmem [#allocation9], %s517_s5 }
  0x2b   : > { %816 = dma.done.wait (%p916_p4), %s249_s26, 2064  }
  0x2c   : > { %818 = vsyncadd (%p916_p4), %s249_s26, 4294965232  ;;  %s1008_s25 = scalar_lea.vmem [#allocation10], %s250_s29  ;;  %p518_p2 = scmp.ne.s32.totalorder %s837_s18, 0 }
  0x2e   : > { %294 = sbr.rel (%p518_p2) target bundleno = 54 (0x36), region = 60 }
  0x33   : > { %v295_v0 = vld [vmem:[#allocation7] sm:$0xff]  ;;  %v296_v1 = vld [vmem:[#allocation7 + $0x8] sm:$0xff] }
  0x34   : > { %297 = vst [vmem:[#allocation2] sm:$0xff] %v295_v0 }
  0x35   : > { %298 = vst [vmem:[#allocation2 + $0x8] sm:$0xff] %v296_v1 }
  0x36 PF: > { %v316_v2 = vld [vmem:[%s1002_s11 + $0x78] sm:$0xff]  ;;  %v315_v3 = vld [vmem:[%s1002_s11 + $0x70] sm:$0xff]  ;;  %v314_v4 = vld [vmem:[%s1002_s11 + $0x68] sm:$0xff]  ;;  %vm352_vm0 = vcmask 130048   ;;  %p382_p1 = scmp.eq.s32.totalorder %s837_s18, 2  ;;  %s851_s28 = smov [#allocation11]  }
  0x37   : > { %526 = vmatpush.msra.mxu2 %v316_v2  ;;  %317 = vmatpush.msra.mxu0 %v316_v2  ;;  %v313_v5 = vld [vmem:[%s1002_s11 + $0x60] sm:$0xff]  ;;  %v312_v6 = vld [vmem:[%s1002_s11 + $0x58] sm:$0xff]  ;;  %v311_v7 = vld [vmem:[%s1002_s11 + $0x50] sm:$0xff]  ;;  %s400_s9 = sshll.u32 %s851_s28, 4  ;;  %s402_s23 = sshll.u32 %s1055_s4, 4  ;;  %s401_s9 = int_to_ptr.vmem [resolvable:$true] %s400_s9  ;;  %s403_s23 = int_to_ptr.hbm [resolvable:$true] %s402_s23 }
  0x38   : > { %v310_v8 = vld [vmem:[%s1002_s11 + $0x48] sm:$0xff]  ;;  %v309_v9 = vld [vmem:[%s1002_s11 + $0x40] sm:$0xff]  ;;  %v308_v10 = vld [vmem:[%s1002_s11 + $0x38] sm:$0xff]  ;;  %s383_s22 = scalar_select %p382_p1, -inf, 0.0 }
  0x39   : > { %527 = vmatpush.msra.mxu2 %v315_v3  ;;  %318 = vmatpush.msra.mxu0 %v315_v3  ;;  %v307_v11 = vld [vmem:[%s1002_s11 + $0x30] sm:$0xff]  ;;  %v306_v12 = vld [vmem:[%s1002_s11 + $0x28] sm:$0xff]  ;;  %v305_v13 = vld [vmem:[%s1002_s11 + $0x20] sm:$0xff]  ;;  %p577_p3 = scmp.eq.s32.totalorder %s908_s21, 2  ;;  %s852_s18 = smov 128  }
  0x3a   : > { %v304_v14 = vld [vmem:[%s1002_s11 + $0x18] sm:$0xff]  ;;  %v303_v15 = vld [vmem:[%s1002_s11 + $0x10] sm:$0xff]  ;;  %v302_v16 = vld [vmem:[%s1002_s11 + $0x8] sm:$0xff]  ;;  %v384_v26 = vstv %s383_s22  ;;  %s853_s14 = smov 8  }
  0x3b   : > { %528 = vmatpush.msra.mxu2 %v314_v4  ;;  %319 = vmatpush.msra.mxu0 %v314_v4  ;;  %v301_v17 = vld [vmem:[%s1002_s11] sm:$0xff]  ;;  %v299_v19 = vld [vmem:[#allocation2] sm:$0xff]  ;;  %v345_v23 = vld [vmem:[#allocation4 + $0x8] sm:$0xff] }
  0x3c   : > { %v300_v18 = vld [vmem:[#allocation2 + $0x8] sm:$0xff]  ;;  %v344_v22 = vld [vmem:[#allocation4] sm:$0xff]  ;;  %v634_v24 = vld [vmem:[%s1008_s25] ss:$0 sm:$0xff] }
  0x3d   : > { %529 = vmatpush.msra.mxu2 %v313_v5  ;;  %320 = vmatpush.msra.mxu0 %v313_v5 }
  0x3f   : > { %530 = vmatpush.msra.mxu2 %v312_v6  ;;  %321 = vmatpush.msra.mxu0 %v312_v6 }
  0x41   : > { %531 = vmatpush.msra.mxu2 %v311_v7  ;;  %322 = vmatpush.msra.mxu0 %v311_v7 }
  0x43   : > { %532 = vmatpush.msra.mxu2 %v310_v8  ;;  %323 = vmatpush.msra.mxu0 %v310_v8 }
  0x45   : > { %533 = vmatpush.msra.mxu2 %v309_v9  ;;  %324 = vmatpush.msra.mxu0 %v309_v9 }
  0x47   : > { %534 = vmatpush.msra.mxu2 %v308_v10  ;;  %325 = vmatpush.msra.mxu0 %v308_v10 }
  0x49   : > { %535 = vmatpush.msra.mxu2 %v307_v11  ;;  %326 = vmatpush.msra.mxu0 %v307_v11 }
  0x4b   : > { %536 = vmatpush.msra.mxu2 %v306_v12  ;;  %327 = vmatpush.msra.mxu0 %v306_v12 }
  0x4d   : > { %537 = vmatpush.msra.mxu2 %v305_v13  ;;  %328 = vmatpush.msra.mxu0 %v305_v13 }
  0x4f   : > { %538 = vmatpush.msra.mxu2 %v304_v14  ;;  %329 = vmatpush.msra.mxu0 %v304_v14 }
  0x51   : > { %539 = vmatpush.msra.mxu2 %v303_v15  ;;  %330 = vmatpush.msra.mxu0 %v303_v15 }
  0x53   : > { %540 = vmatpush.msra.mxu2 %v302_v16  ;;  %331 = vmatpush.msra.mxu0 %v302_v16 }
  0x55   : > { %541 = vmatpush.msra.mxu2 %v301_v17  ;;  %332 = vmatpush.msra.mxu0 %v301_v17 }
  0x56   : > { %336 = vmatmul.f32.vlgmr.msra.gmra.mxu2 %v300_v18  ;;  %333 = vmatmul.f32.vlgmr.msra.gmra.mxu0 %v299_v19 }
  0xd3   : > { %v334_v21 = vpop.f32.mrf.mxu0 }
  0xd9   : > { %v337_v20 = vpop.f32.mrf.mxu2 }
  0xda   : > { %373 = vmatpush.msra.mxu1 %v337_v20 }
  0xdc   : > { %374 = vmatpush.msra.mxu1 %v334_v21 }
  0xdd   : > { %519 = vmatmul.msk.f32.vlgmr.msra.gmra.mxu1 %vm352_vm0, %v344_v22 }
  0xe5   : > { %520 = vmatmul.msk.f32.gmra.mxu1 %vm352_vm0, %v345_v23 }
 0x15a   : > { %v376_v25 = vpop.f32.mrf.mxu1 }
 0x15b   : > { %v377_v27 = vadd.f32 %v634_v24, %v376_v25 }
 0x15d   : > { %v385_v28 = vmax.f32 %v377_v27, %v384_v26 }
 0x15f   : > { %388 = vst [vmem:[#allocation2] sm:$0xff] %v385_v28 }
 0x160   : > { %390 = vst [vmem:[#allocation11] sm:$0xff] %v385_v28 }
 0x162   : > { %v379_v29 = vpop.f32.mrf.mxu1 }
 0x163   : > { %v380_v30 = vadd.f32 %v634_v24, %v379_v29 }
 0x165   : > { %v386_v31 = vmax.f32 %v380_v30, %v384_v26 }
 0x167   : > { %389 = vst [vmem:[#allocation2 + $0x8] sm:$0xff] %v386_v31 }
 0x168   : > { %391 = vst [vmem:[#allocation11 + $0x8] sm:$0xff] %v386_v31 }
 0x169   : > { %555 = dma.vmem_to_hbm [thread:$0]  (%p577_p3), %s401_s9, 256, %s403_s23, [#allocation6], %s852_s18, %s852_s18, %s853_s14  }
 0x16a   : > { %820 = dma.done.wait (%p577_p3), [#allocation6], 256  }
 0x16b   : > { %822 = vsyncadd (%p577_p3), [#allocation6], 4294967040 }
 0x16c PF: > { %s17_s20 = sadd.s32 1, %s845_s20   ;;  %s1069_s15 = smov %s829_s16 }
 0x16d   : > { %p14_p4 = scmp.ge.s32.totalorder %s17_s20, 5   ;;  %s1070_s16 = smov %s833_s17 }
 0x16e   : > { %s1071_s17 = smov %s958_s13  ;;  %s1072_s18 = smov %s841_s19 }
 0x16f   : > { %s1073_s19 = smov %s1075_s6  ;;  %16 = sbr.rel (!%p14_p4) target bundleno = 7 (0x7), region = 102 }
 0x174   :  { %419 = vsyncpa [#allocation5], 1 }
 0x175   :  { %421 = vsyncpa [#allocation5 + $0x1], 1 }
 0x176   :  { %422 = vsyncpa [#allocation8], 1 }
 0x177   :  { %423 = vsyncpa [#allocation6], 1 }
 0x178   :  { %425 = vsyncpa [#allocation6 + $0x1], 1 }

</bundles_post_ra>
